<compile_context>
chip_gen: v5e
topology: v5e:2x2
jax: 0.10.0
libtpu: 0.0.40
codegen_flags: <defaults>
</compile_context>

<pallas_src>
import functools

import jax
import jax.numpy as jnp
from jax.experimental import pallas as pl
from jax.experimental.pallas import tpu as pltpu


def _round_up(x, m):
    return ((x + m - 1) // m) * m


def _fused_encoder_kernel(ids_ref, counts_ref, adj_ref, feat_ref, w_ref,
                          o_ref, acc_ref, *, n, tk, nk, mask_k_tail,
                          precision):
    i = pl.program_id(0)          # output row-block (parallel)
    t = pl.program_id(1)          # position in this row-block's nonzero list

    @pl.when(t == 0)
    def _init():
        acc_ref[...] = jnp.zeros_like(acc_ref)

    # Skip adjacency tiles that are entirely zero for this row block.
    @pl.when(t < counts_ref[i])
    def _accumulate():
        a = adj_ref[...]                       # (tm, tk)  compute dtype
        f = feat_ref[...]                      # (tk, in_f) compute dtype
        if mask_k_tail:
            # Only emitted when N % tk != 0: zero the out-of-bounds K tail
            # on BOTH operands (OOB block padding is unspecified).
            kblk = ids_ref[i * nk + t]
            col = kblk * tk + jax.lax.broadcasted_iota(jnp.int32, (1, tk), 1)
            a = jnp.where(col < n, a, jnp.zeros_like(a))
            row = kblk * tk + jax.lax.broadcasted_iota(jnp.int32, (tk, 1), 0)
            f = jnp.where(row < n, f, jnp.zeros_like(f))
        # h block computed on the fly (weight resident in VMEM), f32 accum.
        h = jnp.dot(f, w_ref[...], preferred_element_type=jnp.float32,
                    precision=precision)
        acc_ref[...] += jnp.dot(a, h.astype(a.dtype),
                                preferred_element_type=jnp.float32,
                                precision=precision)

    @pl.when(t == pl.num_programs(1) - 1)
    def _finalize():
        o_ref[...] = acc_ref[...].astype(o_ref.dtype)


def _block_nonzero_table(adj, tm, tk):
    """Per row-block list of nonzero K-block ids (ascending) and counts."""
    n = adj.shape[0]
    ni = pl.cdiv(n, tm)
    nk = pl.cdiv(n, tk)
    mask = adj != 0
    # Padding the *boolean* mask (not adj itself) to block multiples is cheap.
    mask = jnp.pad(mask, ((0, ni * tm - n), (0, nk * tk - n)))
    blk = mask.reshape(ni, tm, nk, tk).any(axis=(1, 3))            # (ni, nk)
    counts = jnp.sum(blk, axis=1).astype(jnp.int32)                # (ni,)
    # Nonzero block ids first, ascending (stable argsort of the negation).
    ids = jnp.argsort(jnp.logical_not(blk).astype(jnp.int32), axis=1)
    return ids.astype(jnp.int32).reshape(-1), counts               # flat 1-D SMEM


@functools.partial(jax.jit, static_argnames=("tm", "tk", "compute_dtype"))
def encoder_forward(feat, adj, weight, *, tm=512, tk=512,
                    compute_dtype=jnp.bfloat16):
    """Encoder.forward: adj @ (feat @ weight), fused block-sparse kernel."""
    n, in_f = feat.shape
    in_f2, out_f = weight.shape
    assert in_f == in_f2, "feat/weight inner dims mismatch"
    assert adj.shape == (n, n), "adj must be (N, N)"

    # ---- tile sizing (no padding of adj) -----------------------------------
    if n <= tm:
        tm_eff = n                               # full extent
    else:
        tm_eff = max(8, (tm // 8) * 8)           # sublane multiple of 8
    if pl.cdiv(n, tm_eff) < 2 and n > 8:
        # Guarantee >= 2 "parallel" row blocks so v7x's two TCs both get work.
        tm_eff = _round_up(pl.cdiv(n, 2), 8)
    if n <= tk:
        tk_eff = n                               # single K block, full extent
    else:
        tk_eff = max(128, (tk // 128) * 128)     # lane dim multiple of 128

    ni = pl.cdiv(n, tm_eff)
    nk = pl.cdiv(n, tk_eff)

    ids, counts = _block_nonzero_table(adj, tm_eff, tk_eff)

    # Native MXU operand dtype (bf16 fast path); accumulation stays f32.
    adj_c = adj.astype(compute_dtype)
    feat_c = feat.astype(compute_dtype)
    w_c = weight.astype(compute_dtype)
    precision = (jax.lax.Precision.HIGHEST
                 if compute_dtype == jnp.float32 else None)
    out_dtype = jnp.promote_types(feat.dtype, weight.dtype)

    kernel = functools.partial(
        _fused_encoder_kernel, n=n, tk=tk_eff, nk=nk,
        mask_k_tail=(n % tk_eff != 0), precision=precision)

    def _clamped_t(i, t, ids_ref, counts_ref):
        # For skipped steps keep the previous block index -> no redundant DMA.
        c = counts_ref[i]
        return jnp.minimum(t, jnp.maximum(c - 1, 0))

    def adj_map(i, t, ids_ref, counts_ref):
        return (i, ids_ref[i * nk + _clamped_t(i, t, ids_ref, counts_ref)])

    def feat_map(i, t, ids_ref, counts_ref):
        return (ids_ref[i * nk + _clamped_t(i, t, ids_ref, counts_ref)], 0)

    return pl.pallas_call(
        kernel,
        out_shape=jax.ShapeDtypeStruct((n, out_f), out_dtype),
        grid_spec=pltpu.PrefetchScalarGridSpec(
            num_scalar_prefetch=2,
            grid=(ni, nk),
            in_specs=[
                pl.BlockSpec((tm_eff, tk_eff), adj_map),
                pl.BlockSpec((tk_eff, in_f), feat_map),
                pl.BlockSpec((in_f, out_f), lambda i, t, ids, cnt: (0, 0)),
            ],
            out_specs=pl.BlockSpec((tm_eff, out_f),
                                   lambda i, t, ids, cnt: (i, 0)),
            scratch_shapes=[pltpu.VMEM((tm_eff, out_f), jnp.float32)],
        ),
        compiler_params=pltpu.CompilerParams(
            dimension_semantics=("parallel", "arbitrary"),
        ),
    )(ids, counts, adj_c, feat_c, w_c)


# ----------------------------- test harness ---------------------------------
def _make_inputs(key, n, in_feat, out_feat, band):
    kf, kw = jax.random.split(key)
    feat = jax.random.normal(kf, (n, in_feat), jnp.float32)
    # Banded (spatial-neighbourhood-like) adjacency with self loops,
    # row-normalised: a realistic, genuinely block-sparse graph.
    idx = jnp.arange(n)
    a = (jnp.abs(idx[:, None] - idx[None, :]) <= band).astype(jnp.float32)
    adj = a / jnp.sum(a, axis=1, keepdims=True)
    bound = (6.0 / (in_feat + out_feat)) ** 0.5          # xavier_uniform
    weight = jax.random.uniform(kw, (in_feat, out_feat), jnp.float32,
                                minval=-bound, maxval=bound)
    return feat, adj, weight


def _reference(feat, adj, weight):
    h = jnp.dot(feat, weight, precision="highest")
    return jnp.dot(adj, h, precision="highest")


if __name__ == "__main__":
    key = jax.random.PRNGKey(0)
    k1, k2 = jax.random.split(key)

    # Test 1: small, tile-unaligned shapes; exact f32 compute path.
    feat, adj, weight = _make_inputs(k1, 96, 48, 32, band=9)
    out = encoder_forward(feat, adj, weight, compute_dtype=jnp.float32)
    jax.block_until_ready(out)
    ref = _reference(feat, adj, weight)
    assert out.shape == (96, 32)
    assert jnp.allclose(out, ref, atol=1e-3, rtol=1e-3), \
        float(jnp.max(jnp.abs(out - ref)))

    # Test 2: multi-block grid with ragged M/K tails + block-sparse skipping.
    feat2, adj2, weight2 = _make_inputs(k2, 200, 48, 32, band=12)
    out2 = encoder_forward(feat2, adj2, weight2, tm=64, tk=128,
                           compute_dtype=jnp.float32)
    jax.block_until_ready(out2)
    ref2 = _reference(feat2, adj2, weight2)
    assert out2.shape == (200, 32)
    assert jnp.allclose(out2, ref2, atol=1e-3, rtol=1e-3), \
        float(jnp.max(jnp.abs(out2 - ref2)))

    # Test 3: bf16 fast path (f32 accumulation) -- looser tolerance.
    out3 = encoder_forward(feat, adj, weight, compute_dtype=jnp.bfloat16)
    jax.block_until_ready(out3)
    assert out3.shape == (96, 32)
    assert jnp.allclose(out3, ref, atol=5e-2, rtol=5e-2), \
        float(jnp.max(jnp.abs(out3 - ref)))

    print("KERNEL_OK")
</pallas_src>

<mosaic_0001>
module attributes {stable_mosaic.version = 11 : i64} {
  func.func @_fused_encoder_kernel(%arg0: i32, %arg1: i32, %arg2: memref<2xi32, #tpu.memory_space<smem>>, %arg3: memref<2xi32, #tpu.memory_space<smem>>, %arg4: memref<48x96xf32, #tpu.memory_space<vmem>>, %arg5: memref<96x48xf32, #tpu.memory_space<vmem>>, %arg6: memref<48x32xf32, #tpu.memory_space<vmem>>, %arg7: memref<48x32xf32, #tpu.memory_space<vmem>>, %arg8: memref<48x32xf32, #tpu.memory_space<vmem>>) attributes {dimension_semantics = [#tpu.dimension_semantics<parallel>, #tpu.dimension_semantics<arbitrary>], iteration_bounds = array<i64: 2, 1>, scalar_prefetch = 2 : i64, scratch_operands = 1 : i64, tpu.core_type = #tpu.core_type<tc>, window_params = [{transform_indices = @transform_0, window_bounds = array<i64: 48, 96>}, {transform_indices = @transform_1, window_bounds = array<i64: 96, 48>}, {pipeline_mode = #tpu.pipeline_mode<synchronous>, transform_indices = @transform_2, window_bounds = array<i64: 48, 32>}, {transform_indices = @transform_3, window_bounds = array<i64: 48, 32>}]} {
    %c0_i32 = arith.constant 0 : i32
    %0 = arith.cmpi eq, %arg1, %c0_i32 : i32
    %1 = arith.extui %0 : i1 to i32
    %c0_i32_0 = arith.constant 0 : i32
    %2 = arith.cmpi ne, %1, %c0_i32_0 : i32
    scf.if %2 {
      %cst = arith.constant 0.000000e+00 : f32
      %11 = vector.broadcast %cst : f32 to vector<48x32xf32>
      %c0 = arith.constant 0 : index
      %c0_4 = arith.constant 0 : index
      %12 = vector.load %arg8[%c0, %c0_4] : memref<48x32xf32, #tpu.memory_space<vmem>>, vector<48x32xf32>
      tpu.vector_store %arg8[%c0, %c0_4], %11 {strides = array<i32>} : memref<48x32xf32, #tpu.memory_space<vmem>>, vector<48x32xf32>,
    } else {
    }
    %3 = arith.index_cast %arg0 : i32 to index
    %4 = memref.load %arg3[%3] : memref<2xi32, #tpu.memory_space<smem>>
    %5 = arith.cmpi slt, %arg1, %4 : i32
    %6 = arith.extui %5 : i1 to i32
    %c0_i32_1 = arith.constant 0 : i32
    %7 = arith.cmpi ne, %6, %c0_i32_1 : i32
    scf.if %7 {
      %c0 = arith.constant 0 : index
      %c0_4 = arith.constant 0 : index
      %11 = vector.load %arg4[%c0, %c0_4] : memref<48x96xf32, #tpu.memory_space<vmem>>, vector<48x96xf32>
      %c0_5 = arith.constant 0 : index
      %c0_6 = arith.constant 0 : index
      %12 = vector.load %arg5[%c0_5, %c0_6] : memref<96x48xf32, #tpu.memory_space<vmem>>, vector<96x48xf32>
      %c0_7 = arith.constant 0 : index
      %c0_8 = arith.constant 0 : index
      %13 = vector.load %arg6[%c0_7, %c0_8] : memref<48x32xf32, #tpu.memory_space<vmem>>, vector<48x32xf32>
      %cst = arith.constant dense<0.000000e+00> : vector<96x32xf32>
      %14 = tpu.matmul %12, %13, %cst {dimension_numbers = #tpu.dot_dimension_numbers<[1], [0], [0], [1], [0, 0, 1, 1], [], []>, precision = #tpu.contract_precision<fp32>} : vector<96x48xf32>, vector<48x32xf32>, vector<96x32xf32> -> vector<96x32xf32>
      %c0_9 = arith.constant 0 : index
      %c0_10 = arith.constant 0 : index
      %15 = vector.load %arg8[%c0_9, %c0_10] : memref<48x32xf32, #tpu.memory_space<vmem>>, vector<48x32xf32>
      %cst_11 = arith.constant dense<0.000000e+00> : vector<48x32xf32>
      %16 = tpu.matmul %11, %14, %cst_11 {dimension_numbers = #tpu.dot_dimension_numbers<[1], [0], [0], [1], [0, 0, 1, 1], [], []>, precision = #tpu.contract_precision<fp32>} : vector<48x96xf32>, vector<96x32xf32>, vector<48x32xf32> -> vector<48x32xf32>
      %17 = arith.addf %15, %16 : vector<48x32xf32>
      %c0_12 = arith.constant 0 : index
      %c0_13 = arith.constant 0 : index
      %18 = vector.load %arg8[%c0_12, %c0_13] : memref<48x32xf32, #tpu.memory_space<vmem>>, vector<48x32xf32>
      tpu.vector_store %arg8[%c0_12, %c0_13], %17 {strides = array<i32>} : memref<48x32xf32, #tpu.memory_space<vmem>>, vector<48x32xf32>,
    } else {
    }
    %c0_i32_2 = arith.constant 0 : i32
    %8 = arith.cmpi eq, %arg1, %c0_i32_2 : i32
    %9 = arith.extui %8 : i1 to i32
    %c0_i32_3 = arith.constant 0 : i32
    %10 = arith.cmpi ne, %9, %c0_i32_3 : i32
    scf.if %10 {
      %c0 = arith.constant 0 : index
      %c0_4 = arith.constant 0 : index
      %11 = vector.load %arg8[%c0, %c0_4] : memref<48x32xf32, #tpu.memory_space<vmem>>, vector<48x32xf32>
      %c0_5 = arith.constant 0 : index
      %c0_6 = arith.constant 0 : index
      %12 = vector.load %arg7[%c0_5, %c0_6] : memref<48x32xf32, #tpu.memory_space<vmem>>, vector<48x32xf32>
      tpu.vector_store %arg7[%c0_5, %c0_6], %11 {strides = array<i32>} : memref<48x32xf32, #tpu.memory_space<vmem>>, vector<48x32xf32>,
    } else {
    }
    return
  }
  func.func @transform_0(%arg0: i32, %arg1: i32, %arg2: memref<2xi32, #tpu.memory_space<smem>>, %arg3: memref<2xi32, #tpu.memory_space<smem>>) -> (i32, i32) {
    %c1_i32 = arith.constant 1 : i32
    %0 = arith.muli %arg0, %c1_i32 : i32
    %1 = arith.index_cast %arg0 : i32 to index
    %2 = memref.load %arg3[%1] : memref<2xi32, #tpu.memory_space<smem>>
    %c1_i32_0 = arith.constant 1 : i32
    %3 = arith.subi %2, %c1_i32_0 : i32
    %c0_i32 = arith.constant 0 : i32
    %4 = arith.maxsi %3, %c0_i32 : i32
    %5 = arith.minsi %arg1, %4 : i32
    %6 = arith.addi %0, %5 : i32
    %7 = arith.index_cast %6 : i32 to index
    %8 = memref.load %arg2[%7] : memref<2xi32, #tpu.memory_space<smem>>
    %c0_i32_1 = arith.constant 0 : i32
    return %arg0, %8 : i32, i32
  }
  func.func @transform_1(%arg0: i32, %arg1: i32, %arg2: memref<2xi32, #tpu.memory_space<smem>>, %arg3: memref<2xi32, #tpu.memory_space<smem>>) -> (i32, i32) {
    %c1_i32 = arith.constant 1 : i32
    %0 = arith.muli %arg0, %c1_i32 : i32
    %1 = arith.index_cast %arg0 : i32 to index
    %2 = memref.load %arg3[%1] : memref<2xi32, #tpu.memory_space<smem>>
    %c1_i32_0 = arith.constant 1 : i32
    %3 = arith.subi %2, %c1_i32_0 : i32
    %c0_i32 = arith.constant 0 : i32
    %4 = arith.maxsi %3, %c0_i32 : i32
    %5 = arith.minsi %arg1, %4 : i32
    %6 = arith.addi %0, %5 : i32
    %7 = arith.index_cast %6 : i32 to index
    %8 = memref.load %arg2[%7] : memref<2xi32, #tpu.memory_space<smem>>
    %c0_i32_1 = arith.constant 0 : i32
    %c0_i32_2 = arith.constant 0 : i32
    return %8, %c0_i32_1 : i32, i32
  }
  func.func @transform_2(%arg0: i32, %arg1: i32, %arg2: memref<2xi32, #tpu.memory_space<smem>>, %arg3: memref<2xi32, #tpu.memory_space<smem>>) -> (i32, i32) {
    %c0_i32 = arith.constant 0 : i32
    %c0_i32_0 = arith.constant 0 : i32
    %c0_i32_1 = arith.constant 0 : i32
    return %c0_i32, %c0_i32_0 : i32, i32
  }
  func.func @transform_3(%arg0: i32, %arg1: i32, %arg2: memref<2xi32, #tpu.memory_space<smem>>, %arg3: memref<2xi32, #tpu.memory_space<smem>>) -> (i32, i32) {
    %c0_i32 = arith.constant 0 : i32
    %c0_i32_0 = arith.constant 0 : i32
    return %arg0, %c0_i32 : i32, i32
  }
}

</mosaic_0001>

<bundles_post_ra>
// kernel: encoder_forward.1
= control target key start
LH: loop header
LB: loop body
LE: loop exit
PB: predicated region body
PF: predicated region fallthrough
CT: control target
= control target key end

     0   :  { %s1684_s24 = smov [#allocation4]   ;;  %s1685_s25 = smov [#allocation5]   ;;  %s2305_s0 = inlined_call_operand.vmem [shape: s32[2], index: 0, kind: input, shape index: {}]   ;;  %s2306_s2 = inlined_call_operand.vmem [shape: f32[96,96], index: 2, kind: input, shape index: {}]   ;;  %s2307_s3 = inlined_call_operand.vmem [shape: f32[96,48], index: 3, kind: input, shape index: {}]   ;;  %s2308_s4 = inlined_call_operand.vmem [shape: f32[48,32], index: 4, kind: input, shape index: {}]   ;;  %s2309_s5 = inlined_call_operand.vmem [shape: f32[96,32], index: 5, kind: output, shape index: {}]   ;;  %s2310_s1 = inlined_call_operand.vmem [shape: s32[2], index: 1, kind: input, shape index: {}]  }
   0x1   :  { %s11_s20 = sshll.u32 %s2305_s0, 4  ;;  %s16_s23 = sshll.u32 %s2310_s1, 4  ;;  %s12_s20 = int_to_ptr.vmem [resolvable:$true] %s11_s20  ;;  %s17_s23 = int_to_ptr.vmem [resolvable:$true] %s16_s23 }
   0x2   :  { %14 = dma.vmem_to_smem %s12_s20, 16, %s1684_s24, [#allocation3] }
   0x3   :  { %19 = dma.vmem_to_smem %s17_s23, 16, %s1685_s25, [#allocation3] }
   0x4   :  { %1670 = dma.done.wait [#allocation3], 32 }
   0x5   :  { %1671 = vsyncadd [#allocation3], 4294967264 }
   0x6   :  { %22 = sfence }
   0x7   :  { %s1723_s26 = smov 0   ;;  %s1725_s27 = smov 0  }
   0x8   :  { %s1727_s28 = smov 0  }
   0x9 LB: > { %s40_s0 = sadd.s32 1, %s1678_s27  ;;  %p1565_p0 = scmp.ge.s32.totalorder %s1682_s28, 1  ;;  %s1682_s28 = sphi %s1727_s28, %s28_s28   ;;  %s1678_s27 = sphi %s1725_s27, %s2312_s27   ;;  %s1674_s26 = sphi %s1723_s26, %s2311_s26  }
   0xa   : > { %p42_p1 = scmp.ge.s32.totalorder %s40_s0, 2  ;;  %p245_p2 = scmp.lt.s32.totalorder %s1682_s28, 3 }
   0xc   : > { %s2314_s0 = smov (%p42_p1, %s40_s0), 0  ;;  %p246_p3 = pnand %p1565_p0, %p245_p2 }
   0xd   : > { %s293_s1 = sld [smem:[#allocation5 + %s1674_s26]] (!%p246_p3)  ;;  %s301_s29 = smul.u32 (!%p246_p3), 6, %s1674_s26 }
   0xe   : > { %249 = sbr.rel (%p246_p3) target bundleno = 623 (0x26f), region = 32  ;;  %s318_s30 = sld [smem:[#allocation5 + %s1674_s26]] (!%p246_p3) }
   0xf   : > { %p302_p4 = scmp.lt.s32.totalorder (!%p246_p3), %s301_s29, 11  ;;  %s1749_s6 = sld [smem:[#allocation5 + %s1674_s26]] (!%p246_p3) }
  0x13   : > { %vm350_vm0 = vcmask 261120   ;;  %v1686_v0 = vmov 0.0   ;;  %s2316_s29 = smov (!%p302_p4, %s301_s29), 11  ;;  %s1566_s7 = sadd.s32 4294967295, %s293_s1 }
  0x14   : > { %351 = vst.msk [vmem:[#allocation2] sm:$0xff] %vm350_vm0, %v1686_v0  ;;  %s1572_s8 = sshll.u32 %s2316_s29, 3  ;;  %p295_p5 = scmp.gt.s32.totalorder %s1566_s7, 0 }
  0x15   : > { %352 = vst.msk [vmem:[#allocation2 + $0x8] sm:$0xff] %vm350_vm0, %v1686_v0  ;;  %s1569_s9 = sadd.s32 4294967295, %s318_s30  ;;  %s1758_s12 = scalar_lea.vmem %s2309_s5, %s1572_s8 }
  0x16   : > { %353 = vst.msk [vmem:[#allocation2 + $0x10] sm:$0xff] %vm350_vm0, %v1686_v0  ;;  %p320_p6 = scmp.gt.s32.totalorder %s1569_s9, 0  ;;  %s2318_s7 = smov (!%p295_p5, %s1566_s7), 0 }
  0x17   : > { %354 = vst.msk [vmem:[#allocation2 + $0x18] sm:$0xff] %vm350_vm0, %v1686_v0  ;;  %s2322_s7 = smov (%p295_p5, %s2318_s7), 0  ;;  %p1574_p9 = scmp.le.s32.totalorder %s1749_s6, 0 }
  0x18   : > { %355 = vst.msk [vmem:[#allocation2 + $0x20] sm:$0xff] %vm350_vm0, %v1686_v0  ;;  %s2320_s9 = smov (!%p320_p6, %s1569_s9), 0  ;;  %s299_s13 = sadd.s32 %s1674_s26, %s2322_s7 }
  0x19   : > { %356 = vst.msk [vmem:[#allocation2 + $0x28] sm:$0xff] %vm350_vm0, %v1686_v0  ;;  %s2324_s9 = smov (%p320_p6, %s2320_s9), 0  ;;  %s300_s14 = sld [smem:[#allocation4 + %s299_s13]] }
  0x1a   : > { %s324_s15 = sadd.s32 %s1674_s26, %s2324_s9 }
  0x1b   : > { %s325_s16 = sld [smem:[#allocation4 + %s324_s15]] }
  0x1f   : > { %p304_p7 = scmp.lt.s32.totalorder %s300_s14, 0 }
  0x21   : > { %s326_s17 = smul.u32 12, %s325_s16  ;;  %s2326_s14 = smov (!%p304_p7, %s300_s14), 0 }
  0x22   : > { %s306_s18 = sadd.s32 %s2326_s14, %s2316_s29 }
  0x23   : > { %p327_p8 = scmp.lt.s32.totalorder %s326_s17, 11  ;;  %s1568_s19 = sshll.u32 %s306_s18, 3 }
  0x24   : > { %s1765_s22 = scalar_lea.vmem %s2306_s2, %s1568_s19  ;;  %361 = sbr.rel (%p1574_p9) target bundleno = 615 (0x267), region = 40 }
  0x25   : > { %s2328_s17 = smov (!%p327_p8, %s326_s17), 11 }
  0x26   : > { %s1571_s23 = sshll.u32 %s2328_s17, 3 }
  0x27   : > { %s1770_s1 = scalar_lea.vmem %s2307_s3, %s1571_s23 }
  0x29   : > { %v385_v1 = vld [vmem:[%s2308_s4 + $0x28] sm:$0xff]  ;;  %v384_v2 = vld [vmem:[%s2308_s4 + $0x20] sm:$0xff]  ;;  %v383_v3 = vld [vmem:[%s2308_s4 + $0x18] sm:$0xff]  ;;  %vm386_vm1 = vcmask 392192   ;;  %vm981_vm2 = vcmask 785408  }
  0x2a   : > { %v1782_v4 = vand.u32 4294901760, %v385_v1  ;;  %v1784_v5 = vand.u32 4294901760, %v384_v2  ;;  %v1786_v6 = vand.u32 4294901760, %v383_v3  ;;  %v382_v7 = vld [vmem:[%s2308_s4 + $0x10] sm:$0xff]  ;;  %v381_v8 = vld [vmem:[%s2308_s4 + $0x8] sm:$0xff]  ;;  %v380_v9 = vld [vmem:[%s2308_s4] sm:$0xff] }
  0x2b   : > { %v1797_v10 = vand.u32 4294901760, %v382_v7  ;;  %v1799_v11 = vand.u32 4294901760, %v381_v8  ;;  %v1801_v12 = vand.u32 4294901760, %v380_v9  ;;  %v368_v13 = vld [vmem:[%s1770_s1] sm:$0xff]  ;;  %v377_v14 = vld [vmem:[%s1770_s1 + $0x48] sm:$0xff]  ;;  %v378_v38 = vld [vmem:[%s1770_s1 + $0x50] sm:$0xff] }
  0x2c   : > { %434 = vmatpush.msra.mxu0 %v1782_v4  ;;  %1595 = vmatpush.msra.mxu2 %v1782_v4  ;;  %v1808_v15 = vsub.f32 %v385_v1, %v1782_v4  ;;  %v1811_v16 = vsub.f32 %v384_v2, %v1784_v5  ;;  %v388_v17 = vsel %vm386_vm1, %v368_v13, 0  ;;  %v415_v18 = vsel %vm386_vm1, %v377_v14, 0  ;;  %v369_v37 = vld [vmem:[%s1770_s1 + $0x8] sm:$0xff]  ;;  %v370_v45 = vld [vmem:[%s1770_s1 + $0x10] sm:$0xff]  ;;  %v379_v46 = vld [vmem:[%s1770_s1 + $0x58] sm:$0xff] }
  0x2d   : > { %v1815_v19 = vand.u32 4294901760, %v388_v17  ;;  %v1817_v20 = vand.u32 4294901760, %v415_v18  ;;  %v1820_v21 = vsub.f32 %v383_v3, %v1786_v6  ;;  %v1823_v22 = vsub.f32 %v382_v7, %v1797_v10  ;;  %v371_v55 = vld [vmem:[%s1770_s1 + $0x18] sm:$0xff] }
  0x2e   : > { %436 = vmatpush.msra.mxu0 %v1784_v5  ;;  %1596 = vmatpush.msra.mxu2 %v1784_v5  ;;  %v554_v23 = vand.u32 4294901760, %v1808_v15  ;;  %v560_v24 = vand.u32 4294901760, %v1811_v16  ;;  %v1830_v25 = vsub.f32 %v381_v8, %v1799_v11  ;;  %v1833_v26 = vsub.f32 %v380_v9, %v1801_v12 }
  0x2f   : > { %v1836_v27 = vsub.f32 %v388_v17, %v1815_v19  ;;  %v1839_v28 = vsub.f32 %v415_v18, %v1817_v20  ;;  %v566_v29 = vand.u32 4294901760, %v1820_v21  ;;  %v572_v30 = vand.u32 4294901760, %v1823_v22 }
  0x30   : > { %438 = vmatpush.msra.mxu0 %v1786_v6  ;;  %1597 = vmatpush.msra.mxu2 %v1786_v6  ;;  %v555_v31 = vsub.f32 %v1808_v15, %v554_v23  ;;  %v561_v32 = vsub.f32 %v1811_v16, %v560_v24  ;;  %v578_v33 = vand.u32 4294901760, %v1830_v25  ;;  %v584_v41 = vand.u32 4294901760, %v1833_v26 }
  0x31   : > { %v447_v34 = vand.u32 4294901760, %v1836_v27  ;;  %v519_v35 = vand.u32 4294901760, %v1839_v28  ;;  %v567_v36 = vsub.f32 %v1820_v21, %v566_v29  ;;  %v573_v40 = vsub.f32 %v1823_v22, %v572_v30 }
  0x32   : > { %440 = vmatpush.msra.mxu0 %v1797_v10  ;;  %1598 = vmatpush.msra.mxu2 %v1797_v10  ;;  %v556_v39 = vand.u32 4294901760, %v555_v31  ;;  %v562_v42 = vand.u32 4294901760, %v561_v32  ;;  %v579_v48 = vsub.f32 %v1830_v25, %v578_v33  ;;  %v391_v49 = vsel %vm386_vm1, %v369_v37, 0  ;;  %v372_v32 = vld [vmem:[%s1770_s1 + $0x20] sm:$0xff] }
  0x33   : > { %v448_v43 = vsub.f32 %v1836_v27, %v447_v34  ;;  %v520_v44 = vsub.f32 %v1839_v28, %v519_v35  ;;  %v568_v47 = vand.u32 4294901760, %v567_v36  ;;  %v418_v50 = vsel %vm386_vm1, %v378_v38, 0 }
  0x34   : > { %442 = vmatpush.msra.mxu0 %v1799_v11  ;;  %1599 = vmatpush.msra.mxu2 %v1799_v11  ;;  %v1880_v53 = vand.u32 4294901760, %v391_v49  ;;  %v1882_v54 = vand.u32 4294901760, %v418_v50  ;;  %v574_v56 = vand.u32 4294901760, %v573_v40  ;;  %v585_v57 = vsub.f32 %v1833_v26, %v584_v41 }
  0x35   : > { %557 = vmatpush.msra.mxu1 %v556_v39  ;;  %1601 = vmatpush.msra.mxu3 %v556_v39  ;;  %v449_v51 = vand.u32 4294901760, %v448_v43  ;;  %v521_v52 = vand.u32 4294901760, %v520_v44  ;;  %v394_v58 = vsel %vm386_vm1, %v370_v45, 0  ;;  %v421_v59 = vsel %vm386_vm1, %v379_v46, 0  ;;  %v375_v44 = vld [vmem:[%s1770_s1 + $0x38] sm:$0xff] }
  0x36   : > { %444 = vmatpush.msra.mxu0 %v1801_v12  ;;  %1600 = vmatpush.msra.mxu2 %v1801_v12  ;;  %v1893_v60 = vsub.f32 %v391_v49, %v1880_v53  ;;  %v1896_v61 = vsub.f32 %v418_v50, %v1882_v54  ;;  %v1898_v62 = vand.u32 4294901760, %v394_v58  ;;  %v1900_v63 = vand.u32 4294901760, %v421_v59  ;;  %v376_v50 = vld [vmem:[%s1770_s1 + $0x40] sm:$0xff] }
  0x37   : > { %563 = vmatpush.msra.mxu1 %v562_v42  ;;  %1602 = vmatpush.msra.mxu3 %v562_v42  ;;  %v580_v0 = vand.u32 4294901760, %v579_v48  ;;  %v397_v1 = vsel %vm386_vm1, %v371_v55, 0  ;;  %v586_v9 = vand.u32 4294901760, %v585_v57  ;;  %v409_v46 = vsel %vm386_vm1, %v375_v44, 0 }
  0x38   : > { %450 = vmatmul.f32.vlgmr.msra.gmra.mxu0 %v449_v51  ;;  %522 = vmatmul.f32.vlgmr.msra.gmra.mxu2 %v521_v52  ;;  %v455_v2 = vand.u32 4294901760, %v1893_v60  ;;  %v527_v3 = vand.u32 4294901760, %v1896_v61  ;;  %v1906_v7 = vsub.f32 %v394_v58, %v1898_v62  ;;  %v1909_v8 = vsub.f32 %v421_v59, %v1900_v63 }
  0x39   : > { %569 = vmatpush.msra.mxu1 %v568_v47  ;;  %1603 = vmatpush.msra.mxu3 %v568_v47  ;;  %v1996_v49 = vand.u32 4294901760, %v409_v46 }
  0x3a   : > { %649 = vmatpush.msrb.mxu2 %v1808_v15  ;;  %834 = vmatpush.msrb.mxu0 %v554_v23  ;;  %v456_v13 = vsub.f32 %v1893_v60, %v455_v2  ;;  %v528_v14 = vsub.f32 %v1896_v61, %v527_v3  ;;  %v463_v17 = vand.u32 4294901760, %v1906_v7  ;;  %v535_v18 = vand.u32 4294901760, %v1909_v8 }
  0x3b   : > { %575 = vmatpush.msra.mxu1 %v574_v56  ;;  %1604 = vmatpush.msra.mxu3 %v574_v56  ;;  %v1923_v15 = vand.u32 4294901760, %v397_v1  ;;  %v502_v52 = vsub.f32 %v409_v46, %v1996_v49 }
  0x3c   : > { %652 = vmatpush.msrb.mxu2 %v1811_v16  ;;  %838 = vmatpush.msrb.mxu0 %v560_v24  ;;  %v457_v23 = vand.u32 4294901760, %v456_v13  ;;  %v529_v31 = vand.u32 4294901760, %v528_v14  ;;  %v464_v36 = vsub.f32 %v1906_v7, %v463_v17  ;;  %v536_v16 = vsub.f32 %v1909_v8, %v535_v18 }
  0x3d   : > { %581 = vmatpush.msra.mxu1 %v580_v0  ;;  %1605 = vmatpush.msra.mxu3 %v580_v0  ;;  %v1938_v24 = vsub.f32 %v397_v1, %v1923_v15  ;;  %v503_v55 = vand.u32 4294901760, %v502_v52 }
  0x3e   : > { %655 = vmatpush.msrb.mxu2 %v1820_v21  ;;  %842 = vmatpush.msrb.mxu0 %v566_v29  ;;  %v400_v21 = vsel %vm386_vm1, %v372_v32, 0  ;;  %v465_v29 = vand.u32 4294901760, %v464_v36  ;;  %v537_v37 = vand.u32 4294901760, %v536_v16 }
  0x3f   : > { %587 = vmatpush.msra.mxu1 %v586_v9  ;;  %1606 = vmatpush.msra.mxu3 %v586_v9  ;;  %v471_v38 = vand.u32 4294901760, %v1938_v24  ;;  %v1951_v39 = vand.u32 4294901760, %v400_v21  ;;  %v504_v57 = vsub.f32 %v502_v52, %v503_v55 }
  0x40   : > { %458 = vmatmul.f32.gmra.mxu0 %v457_v23  ;;  %530 = vmatmul.f32.gmra.mxu2 %v529_v31 }
  0x41   : > { %589 = vmatmul.f32.vlgmr.msra.gmra.mxu1 %v1815_v19  ;;  %625 = vmatmul.f32.vlgmr.msra.gmra.mxu3 %v1817_v20  ;;  %v505_v59 = vand.u32 4294901760, %v504_v57 }
  0x42   : > { %658 = vmatpush.msrb.mxu2 %v1823_v22  ;;  %737 = vmatpush.msrb.mxu3 %v1782_v4  ;;  %v472_v22 = vsub.f32 %v1938_v24, %v471_v38 }
  0x43   : > { %846 = vmatpush.msrb.mxu0 %v572_v30  ;;  %915 = vmatpush.msrb.mxu1 %v1782_v4  ;;  %v373_v4 = vld [vmem:[%s1770_s1 + $0x28] sm:$0xff] }
  0x44   : > { %661 = vmatpush.msrb.mxu2 %v1830_v25  ;;  %739 = vmatpush.msrb.mxu3 %v1784_v5  ;;  %v1966_v25 = vsub.f32 %v400_v21, %v1951_v39 }
  0x45   : > { %850 = vmatpush.msrb.mxu0 %v578_v33  ;;  %917 = vmatpush.msrb.mxu1 %v1784_v5  ;;  %v403_v5 = vsel %vm386_vm1, %v373_v4, 0  ;;  %v374_v33 = vld [vmem:[%s1770_s1 + $0x30] sm:$0xff] }
  0x46   : > { %664 = vmatpush.msrb.mxu2 %v1833_v26  ;;  %741 = vmatpush.msrb.mxu3 %v1786_v6  ;;  %v479_v26 = vand.u32 4294901760, %v1966_v25  ;;  %v1975_v30 = vand.u32 4294901760, %v403_v5 }
  0x47   : > { %854 = vmatpush.msrb.mxu0 %v584_v41  ;;  %919 = vmatpush.msrb.mxu1 %v1786_v6  ;;  %v473_v6 = vand.u32 4294901760, %v472_v22  ;;  %v406_v41 = vsel %vm386_vm1, %v374_v33, 0 }
  0x48   : > { %466 = vmatmul.f32.gmra.mxu0 %v465_v29  ;;  %538 = vmatmul.f32.gmra.mxu2 %v537_v37  ;;  %v486_v40 = vsub.f32 %v403_v5, %v1975_v30  ;;  %v1987_v43 = vand.u32 4294901760, %v406_v41 }
  0x49   : > { %593 = vmatmul.f32.gmra.mxu1 %v1880_v53  ;;  %629 = vmatmul.f32.gmra.mxu3 %v1882_v54 }
  0x4a   : > { %743 = vmatpush.msrb.mxu3 %v1797_v10  ;;  %921 = vmatpush.msrb.mxu1 %v1797_v10  ;;  %v480_v10 = vsub.f32 %v1966_v25, %v479_v26  ;;  %v487_v42 = vand.u32 4294901760, %v486_v40  ;;  %v494_v45 = vsub.f32 %v406_v41, %v1987_v43 }
  0x4c   : > { %745 = vmatpush.msrb.mxu3 %v1799_v11  ;;  %923 = vmatpush.msrb.mxu1 %v1799_v11  ;;  %v481_v11 = vand.u32 4294901760, %v480_v10  ;;  %v495_v48 = vand.u32 4294901760, %v494_v45 }
  0x4e   : > { %747 = vmatpush.msrb.mxu3 %v1801_v12  ;;  %925 = vmatpush.msrb.mxu1 %v1801_v12  ;;  %v488_v12 = vsub.f32 %v486_v40, %v487_v42  ;;  %v496_v51 = vsub.f32 %v494_v45, %v495_v48 }
  0x50   : > { %474 = vmatmul.f32.gmra.mxu0 %v473_v6  ;;  %667 = vmatmul.f32.vlgmr.msrb.gmra.mxu2 %v1836_v27  ;;  %v489_v47 = vand.u32 4294901760, %v488_v12  ;;  %v412_v27 = vsel %vm386_vm1, %v376_v50, 0 }
  0x51   : > { %597 = vmatmul.f32.gmra.mxu1 %v1898_v62  ;;  %633 = vmatmul.f32.gmra.mxu3 %v1900_v63  ;;  %v509_v56 = vand.u32 4294901760, %v412_v27 }
  0x53   : > { %v510_v58 = vsub.f32 %v412_v27, %v509_v56 }
  0x55   : > { %v511_v0 = vand.u32 4294901760, %v510_v58 }
  0x58   : > { %482 = vmatmul.f32.gmra.mxu0 %v481_v11  ;;  %672 = vmatmul.f32.gmra.mxu2 %v1893_v60  ;;  %v512_v60 = vsub.f32 %v510_v58, %v511_v0 }
  0x59   : > { %601 = vmatmul.f32.gmra.mxu1 %v1923_v15  ;;  %751 = vmatmul.f32.vlgmr.msrb.gmra.mxu3 %v447_v34  ;;  %v497_v34 = vand.u32 4294901760, %v496_v51 }
  0x5a   : > { %v513_v1 = vand.u32 4294901760, %v512_v60 }
  0x60   : > { %490 = vmatmul.f32.gmra.mxu0 %v489_v47  ;;  %677 = vmatmul.f32.gmra.mxu2 %v1906_v7 }
  0x61   : > { %605 = vmatmul.f32.gmra.mxu1 %v1951_v39  ;;  %757 = vmatmul.f32.gmra.mxu3 %v455_v2 }
  0x68   : > { %498 = vmatmul.f32.gmra.mxu0 %v497_v34  ;;  %682 = vmatmul.f32.gmra.mxu2 %v1938_v24 }
  0x69   : > { %609 = vmatmul.f32.gmra.mxu1 %v1975_v30  ;;  %763 = vmatmul.f32.gmra.mxu3 %v463_v17 }
  0x70   : > { %506 = vmatmul.f32.gmra.mxu0 %v505_v59  ;;  %687 = vmatmul.f32.gmra.mxu2 %v1966_v25 }
  0x71   : > { %613 = vmatmul.f32.gmra.mxu1 %v1987_v43  ;;  %769 = vmatmul.f32.gmra.mxu3 %v471_v38 }
  0x78   : > { %514 = vmatmul.f32.gmra.mxu0 %v513_v1  ;;  %692 = vmatmul.f32.gmra.mxu2 %v486_v40 }
  0x79   : > { %617 = vmatmul.f32.gmra.mxu1 %v1996_v49  ;;  %775 = vmatmul.f32.gmra.mxu3 %v479_v26 }
  0x80   : > { %697 = vmatmul.f32.gmra.mxu2 %v494_v45  ;;  %856 = vmatmul.f32.vlgmr.msrb.gmra.mxu0 %v1815_v19 }
  0x81   : > { %621 = vmatmul.f32.gmra.mxu1 %v509_v56  ;;  %781 = vmatmul.f32.gmra.mxu3 %v487_v42 }
  0x88   : > { %702 = vmatmul.f32.gmra.mxu2 %v502_v52  ;;  %860 = vmatmul.f32.gmra.mxu0 %v1880_v53 }
  0x89   : > { %787 = vmatmul.f32.gmra.mxu3 %v495_v48  ;;  %927 = vmatmul.f32.vlgmr.msrb.gmra.mxu1 %v1815_v19 }
  0x90   : > { %707 = vmatmul.f32.gmra.mxu2 %v510_v58  ;;  %864 = vmatmul.f32.gmra.mxu0 %v1898_v62 }
  0x91   : > { %793 = vmatmul.f32.gmra.mxu3 %v503_v55  ;;  %931 = vmatmul.f32.gmra.mxu1 %v1880_v53 }
  0x98   : > { %712 = vmatmul.f32.gmra.mxu2 %v1839_v28  ;;  %868 = vmatmul.f32.gmra.mxu0 %v1923_v15 }
  0x99   : > { %799 = vmatmul.f32.gmra.mxu3 %v511_v0  ;;  %935 = vmatmul.f32.gmra.mxu1 %v1898_v62 }
  0xa0   : > { %717 = vmatmul.f32.gmra.mxu2 %v1896_v61  ;;  %872 = vmatmul.f32.gmra.mxu0 %v1951_v39 }
  0xa1   : > { %805 = vmatmul.f32.gmra.mxu3 %v519_v35  ;;  %939 = vmatmul.f32.gmra.mxu1 %v1923_v15 }
  0xa8   : > { %722 = vmatmul.f32.gmra.mxu2 %v1909_v8  ;;  %876 = vmatmul.f32.gmra.mxu0 %v1975_v30 }
  0xa9   : > { %811 = vmatmul.f32.gmra.mxu3 %v527_v3  ;;  %943 = vmatmul.f32.gmra.mxu1 %v1951_v39 }
  0xb0   : > { %880 = vmatmul.f32.gmra.mxu0 %v1987_v43 }
  0xb1   : > { %817 = vmatmul.f32.gmra.mxu3 %v535_v18  ;;  %947 = vmatmul.f32.gmra.mxu1 %v1975_v30 }
  0xb5   : > { %v451_v19 = vpop.f32.mrf.mxu0 }
  0xb8   : > { %884 = vmatmul.f32.gmra.mxu0 %v1996_v49 }
  0xb9   : > { %951 = vmatmul.f32.gmra.mxu1 %v1987_v43 }
  0xbb   : > { %v2038_v28 = vpop.f32.mrf.mxu2 }
  0xbd   : > { %v459_v35 = vpop.f32.mrf.mxu0 }
  0xbe   : > { %v590_v53 = vpop.f32.mrf.mxu1 }
  0xbf   : > { %v591_v31 = vadd.f32 %v590_v53, %v451_v19 }
  0xc0   : > { %888 = vmatmul.f32.gmra.mxu0 %v509_v56 }
  0xc1   : > { %955 = vmatmul.f32.gmra.mxu1 %v1996_v49 }
  0xc3   : > { %v2041_v61 = vpop.f32.mrf.mxu2 }
  0xc4   : > { %v2043_v62 = vpop.f32.mrf.mxu3 }
  0xc5   : > { %v467_v2 = vpop.f32.mrf.mxu0 }
  0xc6   : > { %v594_v3 = vpop.f32.mrf.mxu1 }
  0xc7   : > { %v595_v38 = vadd.f32 %v594_v3, %v459_v35 }
  0xc8   : > { %892 = vmatmul.f32.gmra.mxu0 %v1817_v20 }
  0xc9   : > { %959 = vmatmul.f32.gmra.mxu1 %v509_v56 }
  0xcb   : > { %v2046_v7 = vpop.f32.mrf.mxu2 }
  0xcc   : > { %v2048_v8 = vpop.f32.mrf.mxu3 }
  0xcd   : > { %v475_v9 = vpop.f32.mrf.mxu0 }
  0xce   : > { %v598_v13 = vpop.f32.mrf.mxu1 }
  0xcf   : > { %v599_v26 = vadd.f32 %v598_v13, %v467_v2 }
  0xd0   : > { %896 = vmatmul.f32.gmra.mxu0 %v1882_v54 }
  0xd1   : > { %963 = vmatmul.f32.gmra.mxu1 %v1817_v20 }
  0xd3   : > { %v668_v14 = vpop.f32.mrf.mxu2 }
  0xd4   : > { %v2052_v17 = vpop.f32.mrf.mxu3  ;;  %v669_v32 = vadd.f32 %v668_v14, %v591_v31 }
  0xd5   : > { %v483_v18 = vpop.f32.mrf.mxu0 }
  0xd6   : > { %v602_v15 = vpop.f32.mrf.mxu1 }
  0xd7   : > { %v603_v23 = vadd.f32 %v602_v15, %v475_v9 }
  0xd8   : > { %900 = vmatmul.f32.gmra.mxu0 %v1900_v63 }
  0xd9   : > { %967 = vmatmul.f32.gmra.mxu1 %v1882_v54 }
  0xdb   : > { %v673_v36 = vpop.f32.mrf.mxu2 }
  0xdc   : > { %v752_v16 = vpop.f32.mrf.mxu3  ;;  %v674_v20 = vadd.f32 %v673_v36, %v595_v38 }
  0xdd   : > { %v753_v24 = vadd.f32 %v752_v16, %v669_v32  ;;  %v491_v21 = vpop.f32.mrf.mxu0 }
  0xde   : > { %v606_v29 = vpop.f32.mrf.mxu1 }
  0xdf   : > { %v607_v37 = vadd.f32 %v606_v29, %v483_v18 }
  0xe1   : > { %971 = vmatmul.f32.gmra.mxu1 %v1900_v63 }
  0xe3   : > { %v678_v39 = vpop.f32.mrf.mxu2 }
  0xe4   : > { %v758_v4 = vpop.f32.mrf.mxu3  ;;  %v679_v54 = vadd.f32 %v678_v39, %v599_v26 }
  0xe5   : > { %v759_v22 = vadd.f32 %v758_v4, %v674_v20  ;;  %v499_v25 = vpop.f32.mrf.mxu0 }
  0xe6   : > { %v610_v5 = vpop.f32.mrf.mxu1 }
  0xe7   : > { %v2057_v6 = vadd.f32 %v610_v5, %v491_v21 }
  0xeb   : > { %v683_v30 = vpop.f32.mrf.mxu2 }
  0xec   : > { %v684_v33 = vadd.f32 %v683_v30, %v603_v23  ;;  %v764_v10 = vpop.f32.mrf.mxu3 }
  0xed   : > { %v765_v40 = vadd.f32 %v764_v10, %v679_v54  ;;  %v507_v41 = vpop.f32.mrf.mxu0 }
  0xee   : > { %v614_v11 = vpop.f32.mrf.mxu1 }
  0xef   : > { %v2059_v42 = vadd.f32 %v614_v11, %v499_v25  ;;  %v627_v11 = vadd.f32 %v2043_v62, %v2038_v28 }
  0xf3   : > { %v688_v43 = vpop.f32.mrf.mxu2 }
  0xf4   : > { %v689_v63 = vadd.f32 %v688_v43, %v607_v37  ;;  %v770_v44 = vpop.f32.mrf.mxu3 }
  0xf5   : > { %v771_v12 = vadd.f32 %v770_v44, %v684_v33  ;;  %v515_v45 = vpop.f32.mrf.mxu0 }
  0xf6   : > { %v618_v46 = vpop.f32.mrf.mxu1 }
  0xf7   : > { %v619_v47 = vadd.f32 %v618_v46, %v507_v41 }
  0xfb   : > { %v693_v2 = vpop.f32.mrf.mxu2 }
  0xfc   : > { %v776_v48 = vpop.f32.mrf.mxu3 }
  0xfd   : > { %v777_v49 = vadd.f32 %v776_v48, %v689_v63  ;;  %v857_v50 = vpop.f32.mrf.mxu0  ;;  %v635_v48 = vadd.f32 %v2052_v17, %v2046_v7 }
  0xfe   : > { %v622_v51 = vpop.f32.mrf.mxu1  ;;  %v858_v52 = vadd.f32 %v857_v50, %v753_v24 }
  0xff   : > { %v623_v27 = vadd.f32 %v622_v51, %v515_v45 }
 0x103   : > { %v698_v15 = vpop.f32.mrf.mxu2 }
 0x104   : > { %v782_v3 = vpop.f32.mrf.mxu3 }
 0x105   : > { %v861_v34 = vpop.f32.mrf.mxu0 }
 0x106   : > { %v862_v55 = vadd.f32 %v861_v34, %v759_v22  ;;  %v928_v56 = vpop.f32.mrf.mxu1 }
 0x107   : > { %v2061_v57 = vadd.f32 %v928_v56, %v858_v52 }
 0x10b   : > { %v703_v24 = vpop.f32.mrf.mxu2 }
 0x10c   : > { %v788_v31 = vpop.f32.mrf.mxu3  ;;  %v704_v51 = vadd.f32 %v703_v24, %v619_v47 }
 0x10d   : > { %v865_v58 = vpop.f32.mrf.mxu0 }
 0x10e   : > { %v866_v59 = vadd.f32 %v865_v58, %v765_v40  ;;  %v932_v0 = vpop.f32.mrf.mxu1  ;;  %v631_v40 = vadd.f32 %v2048_v8, %v2041_v61  ;;  %v699_v61 = vadd.f32 %v698_v15, %v2059_v42 }
 0x10f   : > { %v2063_v60 = vadd.f32 %v932_v0, %v862_v55 }
 0x113   : > { %v708_v20 = vpop.f32.mrf.mxu2 }
 0x114   : > { %v794_v29 = vpop.f32.mrf.mxu3 }
 0x115   : > { %v869_v1 = vpop.f32.mrf.mxu0  ;;  %v795_v56 = vadd.f32 %v794_v29, %v704_v51  ;;  %v2152_v51 = vand.u32 4294901760, %v2063_v60 }
 0x116   : > { %v870_v19 = vadd.f32 %v869_v1, %v771_v12  ;;  %v936_v35 = vpop.f32.mrf.mxu1  ;;  %v709_v12 = vadd.f32 %v708_v20, %v623_v27  ;;  %v694_v27 = vadd.f32 %v693_v2, %v2057_v6 }
 0x117   : > { %v2065_v53 = vadd.f32 %v936_v35, %v866_v59  ;;  %v789_v59 = vadd.f32 %v788_v31, %v699_v61 }
 0x118   : > { %v783_v47 = vadd.f32 %v782_v3, %v694_v27 }
 0x11b   : > { %v713_v25 = vpop.f32.mrf.mxu2 }
 0x11c   : > { %v800_v39 = vpop.f32.mrf.mxu3  ;;  %v714_v63 = vadd.f32 %v713_v25, %v627_v11 }
 0x11d   : > { %v873_v9 = vpop.f32.mrf.mxu0  ;;  %v801_v52 = vadd.f32 %v800_v39, %v709_v12  ;;  %v2140_v12 = vand.u32 4294901760, %v2065_v53 }
 0x11e   : > { %v874_v13 = vadd.f32 %v873_v9, %v777_v49  ;;  %v940_v14 = vpop.f32.mrf.mxu1 }
 0x11f   : > { %v2067_v18 = vadd.f32 %v940_v14, %v870_v19 }
 0x123   : > { %v718_v30 = vpop.f32.mrf.mxu2 }
 0x124   : > { %v806_v5 = vpop.f32.mrf.mxu3  ;;  %v719_v43 = vadd.f32 %v718_v30, %v631_v40  ;;  %v2128_v40 = vand.u32 4294901760, %v2067_v18 }
 0x125   : > { %v877_v23 = vpop.f32.mrf.mxu0  ;;  %v807_v45 = vadd.f32 %v806_v5, %v714_v63 }
 0x126   : > { %v944_v32 = vpop.f32.mrf.mxu1  ;;  %v878_v14 = vadd.f32 %v877_v23, %v783_v47 }
 0x127   : > { %v2069_v36 = vadd.f32 %v944_v32, %v874_v13 }
 0x12b   : > { %v723_v49 = vpop.f32.mrf.mxu2 }
 0x12c   : > { %v812_v33 = vpop.f32.mrf.mxu3  ;;  %v724_v28 = vadd.f32 %v723_v49, %v635_v48 }
 0x12d   : > { %v881_v16 = vpop.f32.mrf.mxu0  ;;  %v813_v44 = vadd.f32 %v812_v33, %v719_v43 }
 0x12e   : > { %v948_v21 = vpop.f32.mrf.mxu1  ;;  %v882_v35 = vadd.f32 %v881_v16, %v789_v59  ;;  %v362_v16 = vld [vmem:[%s1765_s22] sm:$0xff] }
 0x12f   : > { %v949_v31 = vadd.f32 %v948_v21, %v878_v14  ;;  %v983_v5 = vsel %vm981_vm2, %v362_v16, 0 }
 0x131   : > { %v2107_v39 = vand.u32 4294901760, %v949_v31 }
 0x133   : > { %v2134_v11 = vsub.f32 %v949_v31, %v2107_v39 }
 0x134   : > { %v818_v8 = vpop.f32.mrf.mxu3 }
 0x135   : > { %v885_v37 = vpop.f32.mrf.mxu0  ;;  %v819_v1 = vadd.f32 %v818_v8, %v724_v28  ;;  %v1119_v61 = vand.u32 4294901760, %v2134_v11 }
 0x136   : > { %v952_v38 = vpop.f32.mrf.mxu1  ;;  %v886_v19 = vadd.f32 %v885_v37, %v795_v56  ;;  %v2167_v56 = vand.u32 4294901760, %v2061_v57 }
 0x137   : > { %v953_v32 = vadd.f32 %v952_v38, %v882_v35 }
 0x138   : > { %v2192_v47 = vsub.f32 %v2061_v57, %v2167_v56 }
 0x139   : > { %v2096_v20 = vand.u32 4294901760, %v953_v32 }
 0x13d   : > { %v889_v4 = vpop.f32.mrf.mxu0 }
 0x13e   : > { %v956_v22 = vpop.f32.mrf.mxu1  ;;  %v890_v62 = vadd.f32 %v889_v4, %v801_v52  ;;  %v2156_v52 = vsub.f32 %v2067_v18, %v2128_v40  ;;  %v2172_v18 = vsub.f32 %v2065_v53, %v2140_v12  ;;  %v2183_v53 = vsub.f32 %v2063_v60, %v2152_v51 }
 0x13f   : > { %v957_v9 = vadd.f32 %v956_v22, %v886_v19 }
 0x140   : > { %v1131_v19 = vand.u32 4294901760, %v2156_v52 }
 0x141   : > { %v2088_v29 = vand.u32 4294901760, %v957_v9 }
 0x143   : > { %v2110_v4 = vsub.f32 %v957_v9, %v2088_v29  ;;  %v1137_v9 = vand.u32 4294901760, %v2172_v18 }
 0x145   : > { %v893_v26 = vpop.f32.mrf.mxu0  ;;  %v1138_v16 = vsub.f32 %v2172_v18, %v1137_v9 }
 0x146   : > { %v960_v54 = vpop.f32.mrf.mxu1  ;;  %v894_v34 = vadd.f32 %v893_v26, %v807_v45  ;;  %v2118_v26 = vand.u32 4294901760, %v2069_v36  ;;  %v363_v45 = vld [vmem:[%s1765_s22 + $0x8] sm:$0xff] }
 0x147   : > { %v961_v7 = vadd.f32 %v960_v54, %v890_v62  ;;  %v2121_v54 = vsub.f32 %v953_v32, %v2096_v20  ;;  %v986_v8 = vsel %vm981_vm2, %v363_v45, 0  ;;  %v1143_v32 = vand.u32 4294901760, %v2183_v53 }
 0x148   : > { %v2179_v59 = vand.u32 4294901760, %v986_v8 }
 0x149   : > { %v2083_v24 = vand.u32 4294901760, %v961_v7 }
 0x14a   : > { %v2202_v14 = vsub.f32 %v986_v8, %v2179_v59 }
 0x14b   : > { %v2099_v23 = vsub.f32 %v961_v7, %v2083_v24  ;;  %v364_v7 = vld [vmem:[%s1765_s22 + $0x10] sm:$0xff] }
 0x14d   : > { %v897_v41 = vpop.f32.mrf.mxu0 }
 0x14e   : > { %v964_v10 = vpop.f32.mrf.mxu1  ;;  %v898_v46 = vadd.f32 %v897_v41, %v813_v44  ;;  %v2131_v41 = vand.u32 4294901760, %v983_v5  ;;  %v1107_v44 = vand.u32 4294901760, %v2110_v4 }
 0x14f   : > { %v965_v58 = vadd.f32 %v964_v10, %v894_v34  ;;  %v1101_v10 = vand.u32 4294901760, %v2099_v23 }
 0x151   : > { %v2081_v13 = vand.u32 4294901760, %v965_v58  ;;  %v1102_v49 = vsub.f32 %v2099_v23, %v1101_v10 }
 0x153   : > { %v2091_v37 = vsub.f32 %v965_v58, %v2081_v13  ;;  %v1103_v28 = vand.u32 4294901760, %v1102_v49 }
 0x155   : > { %v901_v0 = vpop.f32.mrf.mxu0  ;;  %v1095_v25 = vand.u32 4294901760, %v2091_v37 }
 0x156   : > { %v968_v50 = vpop.f32.mrf.mxu1  ;;  %v902_v42 = vadd.f32 %v901_v0, %v819_v1  ;;  %v1120_v1 = vsub.f32 %v2134_v11, %v1119_v61 }
 0x157   : > { %v969_v55 = vadd.f32 %v968_v50, %v898_v46  ;;  %v1096_v63 = vsub.f32 %v2091_v37, %v1095_v25  ;;  %v2146_v46 = vsub.f32 %v2069_v36, %v2118_v26  ;;  %v1113_v50 = vand.u32 4294901760, %v2121_v54 }
 0x158   : > { %v2160_v36 = vsub.f32 %v983_v5, %v2131_v41  ;;  %v1121_v57 = vand.u32 4294901760, %v1120_v1 }
 0x159   : > { %v2079_v17 = vand.u32 4294901760, %v969_v55  ;;  %v1097_v34 = vand.u32 4294901760, %v1096_v63  ;;  %v1114_v62 = vsub.f32 %v2121_v54, %v1113_v50  ;;  %v1125_v58 = vand.u32 4294901760, %v2146_v46 }
 0x15a   : > { %v1030_v27 = vand.u32 4294901760, %v2160_v36 }
 0x15b   : > { %v2086_v6 = vsub.f32 %v969_v55, %v2079_v17  ;;  %v1108_v55 = vsub.f32 %v2110_v4, %v1107_v44  ;;  %v1115_v60 = vand.u32 4294901760, %v1114_v62  ;;  %v1126_v35 = vsub.f32 %v2146_v46, %v1125_v58 }
 0x15d   : > { %v1089_v21 = vand.u32 4294901760, %v2086_v6  ;;  %v1109_v0 = vand.u32 4294901760, %v1108_v55  ;;  %v1127_v31 = vand.u32 4294901760, %v1126_v35 }
 0x15e   : > { %v972_v15 = vpop.f32.mrf.mxu1 }
 0x15f   : > { %v973_v2 = vadd.f32 %v972_v15, %v902_v42  ;;  %v1090_v33 = vsub.f32 %v2086_v6, %v1089_v21  ;;  %v1031_v42 = vsub.f32 %v2160_v36, %v1030_v27  ;;  %v1132_v15 = vsub.f32 %v2156_v52, %v1131_v19 }
 0x161   : > { %v2093_v3 = vand.u32 4294901760, %v973_v2  ;;  %v1091_v48 = vand.u32 4294901760, %v1090_v33  ;;  %v1144_v33 = vsub.f32 %v2183_v53, %v1143_v32 }
 0x163   : > { %v2102_v38 = vsub.f32 %v973_v2, %v2093_v3  ;;  %1005 = vmatpush.msra.mxu2 %v2093_v3  ;;  %1396 = vmatpush.msra.mxu1 %v2093_v3  ;;  %v989_v2 = vsel %vm981_vm2, %v364_v7, 0 }
 0x164   : > { %v2214_v5 = vand.u32 4294901760, %v989_v2 }
 0x165   : > { %v1083_v22 = vand.u32 4294901760, %v2102_v38  ;;  %1007 = vmatpush.msra.mxu2 %v2079_v17  ;;  %1398 = vmatpush.msra.mxu1 %v2079_v17 }
 0x166   : > { %v2226_v45 = vsub.f32 %v989_v2, %v2214_v5 }
 0x167   : > { %v1084_v30 = vsub.f32 %v2102_v38, %v1083_v22  ;;  %1009 = vmatpush.msra.mxu2 %v2081_v13  ;;  %1321 = vmatpush.msra.mxu0 %v1083_v22  ;;  %v1032_v22 = vand.u32 4294901760, %v1031_v42 }
 0x168   : > { %1400 = vmatpush.msra.mxu1 %v2081_v13 }
 0x169   : > { %1011 = vmatpush.msra.mxu2 %v2083_v24  ;;  %1325 = vmatpush.msra.mxu0 %v1089_v21  ;;  %v1085_v43 = vand.u32 4294901760, %v1084_v30  ;;  %v1149_v21 = vand.u32 4294901760, %v2192_v47  ;;  %v1133_v30 = vand.u32 4294901760, %v1132_v15 }
 0x16a   : > { %1402 = vmatpush.msra.mxu1 %v2083_v24 }
 0x16b   : > { %1013 = vmatpush.msra.mxu2 %v2088_v29  ;;  %1086 = vmatpush.msra.mxu3 %v1085_v43  ;;  %v1139_v43 = vand.u32 4294901760, %v1138_v16  ;;  %v1150_v63 = vsub.f32 %v2192_v47, %v1149_v21 }
 0x16c   : > { %1329 = vmatpush.msra.mxu0 %v1095_v25  ;;  %1404 = vmatpush.msra.mxu1 %v2088_v29  ;;  %v1038_v25 = vand.u32 4294901760, %v2202_v14 }
 0x16d   : > { %1015 = vmatpush.msra.mxu2 %v2096_v20  ;;  %1092 = vmatpush.msra.mxu3 %v1091_v48  ;;  %v1145_v48 = vand.u32 4294901760, %v1144_v33  ;;  %v1151_v49 = vand.u32 4294901760, %v1150_v63 }
 0x16e   : > { %1333 = vmatpush.msra.mxu0 %v1101_v10  ;;  %1406 = vmatpush.msra.mxu1 %v2096_v20  ;;  %v365_v10 = vld [vmem:[%s1765_s22 + $0x18] sm:$0xff] }
 0x16f   : > { %1017 = vmatpush.msra.mxu2 %v2107_v39  ;;  %1098 = vmatpush.msra.mxu3 %v1097_v34  ;;  %v1046_v34 = vand.u32 4294901760, %v2226_v45 }
 0x170   : > { %1337 = vmatpush.msra.mxu0 %v1107_v44  ;;  %1408 = vmatpush.msra.mxu1 %v2107_v39  ;;  %v1039_v44 = vsub.f32 %v2202_v14, %v1038_v25 }
 0x171   : > { %1019 = vmatpush.msra.mxu2 %v2118_v26  ;;  %1104 = vmatpush.msra.mxu3 %v1103_v28 }
 0x172   : > { %1341 = vmatpush.msra.mxu0 %v1113_v50  ;;  %1410 = vmatpush.msra.mxu1 %v2118_v26  ;;  %v1040_v50 = vand.u32 4294901760, %v1039_v44 }
 0x173   : > { %1021 = vmatpush.msra.mxu2 %v2128_v40  ;;  %1110 = vmatpush.msra.mxu3 %v1109_v0 }
 0x174   : > { %1345 = vmatpush.msra.mxu0 %v1119_v61  ;;  %1412 = vmatpush.msra.mxu1 %v2128_v40 }
 0x175   : > { %1023 = vmatpush.msra.mxu2 %v2140_v12  ;;  %1116 = vmatpush.msra.mxu3 %v1115_v60 }
 0x176   : > { %1349 = vmatpush.msra.mxu0 %v1125_v58  ;;  %1414 = vmatpush.msra.mxu1 %v2140_v12 }
 0x177   : > { %1025 = vmatpush.msra.mxu2 %v2152_v51  ;;  %1122 = vmatpush.msra.mxu3 %v1121_v57 }
 0x178   : > { %1353 = vmatpush.msra.mxu0 %v1131_v19  ;;  %1416 = vmatpush.msra.mxu1 %v2152_v51 }
 0x179   : > { %1027 = vmatpush.msra.mxu2 %v2167_v56  ;;  %1128 = vmatpush.msra.mxu3 %v1127_v31 }
 0x17a   : > { %1357 = vmatpush.msra.mxu0 %v1137_v9  ;;  %1418 = vmatpush.msra.mxu1 %v2167_v56 }
 0x17b   : > { %1184 = vmatpush.msrb.mxu2 %v2102_v38  ;;  %1134 = vmatpush.msra.mxu3 %v1133_v30  ;;  %v992_v38 = vsel %vm981_vm2, %v365_v10, 0  ;;  %v976_v10 = vld [vmem:[#allocation2 + $0x8] sm:$0xff] }
 0x17c   : > { %1361 = vmatpush.msra.mxu0 %v1143_v32  ;;  %1033 = vmatmul.f32.vlgmr.msra.gmra.mxu2 %v1032_v22  ;;  %v1052_v55 = vand.u32 4294901760, %v992_v38  ;;  %v975_v32 = vld [vmem:[#allocation2] sm:$0xff] }
 0x17d   : > { %1187 = vmatpush.msrb.mxu2 %v2086_v6  ;;  %1140 = vmatpush.msra.mxu3 %v1139_v43  ;;  %v366_v6 = vld [vmem:[%s1765_s22 + $0x20] sm:$0xff] }
 0x17e   : > { %1365 = vmatpush.msra.mxu0 %v1149_v21  ;;  %1420 = vmatmul.f32.vlgmr.msra.gmra.mxu1 %v2131_v41  ;;  %v1053_v61 = vsub.f32 %v992_v38, %v1052_v55 }
 0x17f   : > { %1190 = vmatpush.msrb.mxu2 %v2091_v37  ;;  %1146 = vmatpush.msra.mxu3 %v1145_v48  ;;  %v1047_v37 = vsub.f32 %v2226_v45, %v1046_v34 }
 0x180   : > { %1367 = vmatmul.f32.vlgmr.msra.gmra.mxu0 %v2131_v41 }
 0x181   : > { %1193 = vmatpush.msrb.mxu2 %v2099_v23  ;;  %1152 = vmatpush.msra.mxu3 %v1151_v49  ;;  %v995_v23 = vsel %vm981_vm2, %v366_v6, 0 }
 0x182   : > { %1154 = vmatmul.f32.vlgmr.msra.gmra.mxu3 %v2131_v41 }
 0x183   : > { %1254 = vmatpush.msrb.mxu3 %v2093_v3  ;;  %1196 = vmatpush.msrb.mxu2 %v2110_v4  ;;  %v1054_v3 = vand.u32 4294901760, %v1053_v61  ;;  %v1060_v4 = vand.u32 4294901760, %v995_v23 }
 0x184   : > { %1041 = vmatmul.f32.gmra.mxu2 %v1040_v50 }
 0x185   : > { %1256 = vmatpush.msrb.mxu3 %v2079_v17  ;;  %1199 = vmatpush.msrb.mxu2 %v2121_v54  ;;  %v1048_v17 = vand.u32 4294901760, %v1047_v37  ;;  %v367_v54 = vld [vmem:[%s1765_s22 + $0x28] sm:$0xff]  ;;  %v1061_v41 = vsub.f32 %v995_v23, %v1060_v4 }
 0x186   : > { %1424 = vmatmul.f32.gmra.mxu1 %v2179_v59 }
 0x187   : > { %1258 = vmatpush.msrb.mxu3 %v2081_v13  ;;  %1202 = vmatpush.msrb.mxu2 %v2134_v11  ;;  %v1055_v13 = vsub.f32 %v1053_v61, %v1054_v3  ;;  %v1062_v11 = vand.u32 4294901760, %v1061_v41 }
 0x188   : > { %1371 = vmatmul.f32.gmra.mxu0 %v2179_v59 }
 0x189   : > { %1260 = vmatpush.msrb.mxu3 %v2083_v24  ;;  %1205 = vmatpush.msrb.mxu2 %v2146_v46  ;;  %v998_v24 = vsel %vm981_vm2, %v367_v54, 0 }
 0x18a   : > { %1158 = vmatmul.f32.gmra.mxu3 %v2179_v59  ;;  %v1068_v46 = vand.u32 4294901760, %v998_v24 }
 0x18b   : > { %1262 = vmatpush.msrb.mxu3 %v2088_v29  ;;  %1208 = vmatpush.msrb.mxu2 %v2156_v52  ;;  %v1056_v29 = vand.u32 4294901760, %v1055_v13 }
 0x18c   : > { %1049 = vmatmul.f32.gmra.mxu2 %v1048_v17 }
 0x18d   : > { %1264 = vmatpush.msrb.mxu3 %v2096_v20  ;;  %1211 = vmatpush.msrb.mxu2 %v2172_v18  ;;  %v1063_v20 = vsub.f32 %v1061_v41, %v1062_v11 }
 0x18e   : > { %1428 = vmatmul.f32.gmra.mxu1 %v2214_v5 }
 0x18f   : > { %1266 = vmatpush.msrb.mxu3 %v2107_v39  ;;  %1214 = vmatpush.msrb.mxu2 %v2183_v53  ;;  %v1069_v39 = vsub.f32 %v998_v24, %v1068_v46  ;;  %v978_v24 = vld [vmem:[#allocation2 + $0x18] sm:$0xff] }
 0x190   : > { %1375 = vmatmul.f32.gmra.mxu0 %v2214_v5 }
 0x191   : > { %1268 = vmatpush.msrb.mxu3 %v2118_v26  ;;  %1217 = vmatpush.msrb.mxu2 %v2192_v47  ;;  %v1064_v26 = vand.u32 4294901760, %v1063_v20  ;;  %v1070_v52 = vand.u32 4294901760, %v1069_v39 }
 0x192   : > { %1162 = vmatmul.f32.gmra.mxu3 %v2214_v5 }
 0x193   : > { %1270 = vmatpush.msrb.mxu3 %v2128_v40  ;;  %v1071_v8 = vsub.f32 %v1069_v39, %v1070_v52 }
 0x194   : > { %1057 = vmatmul.f32.gmra.mxu2 %v1056_v29 }
 0x195   : > { %1272 = vmatpush.msrb.mxu3 %v2140_v12  ;;  %v1072_v40 = vand.u32 4294901760, %v1071_v8 }
 0x196   : > { %1432 = vmatmul.f32.gmra.mxu1 %v1052_v55 }
 0x197   : > { %1274 = vmatpush.msrb.mxu3 %v2152_v51 }
 0x198   : > { %1379 = vmatmul.f32.gmra.mxu0 %v1052_v55 }
 0x199   : > { %1276 = vmatpush.msrb.mxu3 %v2167_v56 }
 0x19a   : > { %1166 = vmatmul.f32.gmra.mxu3 %v1052_v55  ;;  %v977_v55 = vld [vmem:[#allocation2 + $0x10] sm:$0xff] }
 0x19c   : > { %1065 = vmatmul.f32.gmra.mxu2 %v1064_v26 }
 0x19e   : > { %1436 = vmatmul.f32.gmra.mxu1 %v1060_v4 }
 0x1a0   : > { %1383 = vmatmul.f32.gmra.mxu0 %v1060_v4 }
 0x1a2   : > { %1170 = vmatmul.f32.gmra.mxu3 %v1060_v4 }
 0x1a4   : > { %1073 = vmatmul.f32.gmra.mxu2 %v1072_v40 }
 0x1a6   : > { %1440 = vmatmul.f32.gmra.mxu1 %v1068_v46 }
 0x1a8   : > { %1387 = vmatmul.f32.gmra.mxu0 %v1068_v46 }
 0x1aa   : > { %1174 = vmatmul.f32.gmra.mxu3 %v1068_v46 }
 0x1ac   : > { %1220 = vmatmul.f32.vlgmr.msrb.gmra.mxu2 %v2160_v36 }
 0x1b2   : > { %1280 = vmatmul.f32.vlgmr.msrb.gmra.mxu3 %v1030_v27 }
 0x1b4   : > { %1225 = vmatmul.f32.gmra.mxu2 %v2202_v14 }
 0x1ba   : > { %1286 = vmatmul.f32.gmra.mxu3 %v1038_v25 }
 0x1bc   : > { %1230 = vmatmul.f32.gmra.mxu2 %v2226_v45 }
 0x1c2   : > { %1292 = vmatmul.f32.gmra.mxu3 %v1046_v34 }
 0x1c4   : > { %1235 = vmatmul.f32.gmra.mxu2 %v1053_v61 }
 0x1ca   : > { %1298 = vmatmul.f32.gmra.mxu3 %v1054_v3 }
 0x1cc   : > { %1240 = vmatmul.f32.gmra.mxu2 %v1061_v41 }
 0x1d2   : > { %1304 = vmatmul.f32.gmra.mxu3 %v1062_v11 }
 0x1d4   : > { %1245 = vmatmul.f32.gmra.mxu2 %v1069_v39 }
 0x1da   : > { %1310 = vmatmul.f32.gmra.mxu3 %v1070_v52 }
 0x1fb   : > { %v1421_v19 = vpop.f32.mrf.mxu1 }
 0x1fd   : > { %v1368_v0 = vpop.f32.mrf.mxu0 }
 0x1ff   : > { %v1034_v12 = vpop.f32.mrf.mxu2 }
 0x203   : > { %v1425_v57 = vpop.f32.mrf.mxu1 }
 0x205   : > { %v1155_v51 = vpop.f32.mrf.mxu3  ;;  %v1372_v9 = vpop.f32.mrf.mxu0 }
 0x206   : > { %v1156_v47 = vadd.f32 %v1155_v51, %v1034_v12  ;;  %v979_v12 = vld [vmem:[#allocation2 + $0x20] sm:$0xff] }
 0x207   : > { %v1042_v36 = vpop.f32.mrf.mxu2 }
 0x20b   : > { %v1429_v43 = vpop.f32.mrf.mxu1 }
 0x20d   : > { %v1159_v56 = vpop.f32.mrf.mxu3  ;;  %v1376_v30 = vpop.f32.mrf.mxu0 }
 0x20e   : > { %v1160_v2 = vadd.f32 %v1159_v56, %v1042_v36 }
 0x20f   : > { %v1050_v18 = vpop.f32.mrf.mxu2 }
 0x213   : > { %v1433_v23 = vpop.f32.mrf.mxu1 }
 0x215   : > { %v1163_v28 = vpop.f32.mrf.mxu3  ;;  %v1380_v6 = vpop.f32.mrf.mxu0 }
 0x216   : > { %v1164_v63 = vadd.f32 %v1163_v28, %v1050_v18 }
 0x217   : > { %v1058_v62 = vpop.f32.mrf.mxu2 }
 0x21b   : > { %v1437_v52 = vpop.f32.mrf.mxu1 }
 0x21d   : > { %v1167_v58 = vpop.f32.mrf.mxu3  ;;  %v1384_v46 = vpop.f32.mrf.mxu0 }
 0x21e   : > { %v1168_v37 = vadd.f32 %v1167_v58, %v1058_v62 }
 0x21f   : > { %v1066_v27 = vpop.f32.mrf.mxu2 }
 0x225   : > { %v1171_v59 = vpop.f32.mrf.mxu3  ;;  %v1388_v58 = vpop.f32.mrf.mxu0 }
 0x226   : > { %v1172_v29 = vadd.f32 %v1171_v59, %v1066_v27  ;;  %v1441_v59 = vpop.f32.mrf.mxu1 }
 0x227   : > { %v1074_v53 = vpop.f32.mrf.mxu2 }
 0x22d   : > { %v1175_v1 = vpop.f32.mrf.mxu3 }
 0x22e   : > { %v1176_v36 = vadd.f32 %v1175_v1, %v1074_v53 }
 0x22f   : > { %v1221_v7 = vpop.f32.mrf.mxu2 }
 0x230   : > { %v1222_v60 = vadd.f32 %v1221_v7, %v1156_v47 }
 0x235   : > { %v1281_v35 = vpop.f32.mrf.mxu3 }
 0x236   : > { %v1282_v42 = vadd.f32 %v1281_v35, %v1222_v60 }
 0x237   : > { %v1226_v14 = vpop.f32.mrf.mxu2 }
 0x238   : > { %v1369_v15 = vadd.f32 %v1368_v0, %v1282_v42  ;;  %v1227_v21 = vadd.f32 %v1226_v14, %v1160_v2 }
 0x23a   : > { %v1422_v31 = vadd.f32 %v1421_v19, %v1369_v15  ;;  %v980_v19 = vld [vmem:[#allocation2 + $0x28] sm:$0xff] }
 0x23c   : > { %v1444_v16 = vadd.f32 %v1422_v31, %v975_v32 }
 0x23d   : > { %v1287_v22 = vpop.f32.mrf.mxu3 }
 0x23e   : > { %1451 = vst.msk [vmem:[#allocation2] sm:$0xff] %vm350_vm0, %v1444_v16  ;;  %v1288_v25 = vadd.f32 %v1287_v22, %v1227_v21 }
 0x23f   : > { %v1231_v5 = vpop.f32.mrf.mxu2 }
 0x240   : > { %v1373_v33 = vadd.f32 %v1372_v9, %v1288_v25  ;;  %v1232_v48 = vadd.f32 %v1231_v5, %v1164_v63 }
 0x242   : > { %v1426_v44 = vadd.f32 %v1425_v57, %v1373_v33 }
 0x244   : > { %v1445_v45 = vadd.f32 %v1426_v44, %v976_v10 }
 0x245   : > { %v1293_v38 = vpop.f32.mrf.mxu3 }
 0x246   : > { %1452 = vst.msk [vmem:[#allocation2 + $0x8] sm:$0xff] %vm350_vm0, %v1445_v45  ;;  %v1294_v49 = vadd.f32 %v1293_v38, %v1232_v48 }
 0x247   : > { %v1236_v50 = vpop.f32.mrf.mxu2 }
 0x248   : > { %v1377_v34 = vadd.f32 %v1376_v30, %v1294_v49  ;;  %v1237_v3 = vadd.f32 %v1236_v50, %v1168_v37 }
 0x24a   : > { %v1430_v61 = vadd.f32 %v1429_v43, %v1377_v34 }
 0x24c   : > { %v1446_v17 = vadd.f32 %v1430_v61, %v977_v55 }
 0x24d   : > { %v1299_v4 = vpop.f32.mrf.mxu3 }
 0x24e   : > { %1453 = vst.msk [vmem:[#allocation2 + $0x10] sm:$0xff] %vm350_vm0, %v1446_v17  ;;  %v1300_v54 = vadd.f32 %v1299_v4, %v1237_v3 }
 0x24f   : > { %v1241_v13 = vpop.f32.mrf.mxu2 }
 0x250   : > { %v1381_v41 = vadd.f32 %v1380_v6, %v1300_v54  ;;  %v1242_v39 = vadd.f32 %v1241_v13, %v1172_v29 }
 0x252   : > { %v1434_v11 = vadd.f32 %v1433_v23, %v1381_v41 }
 0x254   : > { %v1447_v20 = vadd.f32 %v1434_v11, %v978_v24 }
 0x255   : > { %v1305_v26 = vpop.f32.mrf.mxu3 }
 0x256   : > { %1454 = vst.msk [vmem:[#allocation2 + $0x18] sm:$0xff] %vm350_vm0, %v1447_v20  ;;  %v1306_v8 = vadd.f32 %v1305_v26, %v1242_v39 }
 0x257   : > { %v1246_v51 = vpop.f32.mrf.mxu2 }
 0x258   : > { %v1385_v40 = vadd.f32 %v1384_v46, %v1306_v8  ;;  %v1247_v28 = vadd.f32 %v1246_v51, %v1176_v36 }
 0x25a   : > { %v1438_v56 = vadd.f32 %v1437_v52, %v1385_v40 }
 0x25c   : > { %v1448_v18 = vadd.f32 %v1438_v56, %v979_v12 }
 0x25d   : > { %v1311_v62 = vpop.f32.mrf.mxu3 }
 0x25e   : > { %1455 = vst.msk [vmem:[#allocation2 + $0x20] sm:$0xff] %vm350_vm0, %v1448_v18  ;;  %v1312_v27 = vadd.f32 %v1311_v62, %v1247_v28 }
 0x260   : > { %v1389_v0 = vadd.f32 %v1388_v58, %v1312_v27 }
 0x262   : > { %v1442_v7 = vadd.f32 %v1441_v59, %v1389_v0 }
 0x264   : > { %v1449_v47 = vadd.f32 %v1442_v7, %v980_v19 }
 0x266   : > { %1456 = vst.msk [vmem:[#allocation2 + $0x28] sm:$0xff] %vm350_vm0, %v1449_v47 }
 0x267 PF: > { %v1460_v60 = vld [vmem:[#allocation2] sm:$0xff]  ;;  %v1461_v53 = vld [vmem:[#allocation2 + $0x8] sm:$0xff]  ;;  %v1462_v1 = vld [vmem:[#allocation2 + $0x10] sm:$0xff] }
 0x268   : > { %1467 = vst.msk [vmem:[%s1758_s12] sm:$0xff] %vm350_vm0, %v1460_v60  ;;  %v1463_v35 = vld [vmem:[#allocation2 + $0x18] sm:$0xff]  ;;  %v1464_v9 = vld [vmem:[#allocation2 + $0x20] sm:$0xff] }
 0x269   : > { %1468 = vst.msk [vmem:[%s1758_s12 + $0x8] sm:$0xff] %vm350_vm0, %v1461_v53 }
 0x26a   : > { %1469 = vst.msk [vmem:[%s1758_s12 + $0x10] sm:$0xff] %vm350_vm0, %v1462_v1 }
 0x26b   : > { %1470 = vst.msk [vmem:[%s1758_s12 + $0x18] sm:$0xff] %vm350_vm0, %v1463_v35 }
 0x26c   : > { %1471 = vst.msk [vmem:[%s1758_s12 + $0x20] sm:$0xff] %vm350_vm0, %v1464_v9 }
 0x26d   : > { %v1465_v42 = vld [vmem:[#allocation2 + $0x28] sm:$0xff] }
 0x26e   : > { %1472 = vst.msk [vmem:[%s1758_s12 + $0x28] sm:$0xff] %vm350_vm0, %v1465_v42 }
 0x26f PF: > { %s28_s28 = sadd.s32 1, %s1682_s28   ;;  %s2311_s26 = smov %s1678_s27 }
 0x270   : > { %p25_p10 = scmp.ge.s32.totalorder %s28_s28, 4   ;;  %s2312_s27 = smov %s2314_s0 }
 0x272   :  { %27 = sbr.rel (!%p25_p10) target bundleno = 9 (0x9), region = 77 }

</bundles_post_ra>
